<compile_context>
chip_gen: v6e
topology: v6e:2x2x1
jax: 0.10.0
libtpu: 0.0.40
codegen_flags: <defaults>
</compile_context>

<pallas_src>
import jax
import jax.numpy as jnp
from jax.experimental import pallas as pl
from jax.experimental.pallas import tpu as pltpu

_LANE = 128


def _rowsum_linear_kernel(b_ref, x_ref, w_ref, o_ref, acc_ref):
    # b_ref  : (1,)      SMEM  -- bias scalar
    # x_ref  : (TB, TK)  VMEM  -- batch x feature tile of flattened inputs
    # w_ref  : (1, TK)   VMEM  -- weight row tile
    # o_ref  : (1, TB)   VMEM  -- lane-dense output row (resident across K)
    # acc_ref: (1, TB)   VMEM  -- f32 accumulator scratch
    k = pl.program_id(1)

    @pl.when(k == 0)
    def _():
        acc_ref[...] = jnp.zeros_like(acc_ref)

    p = x_ref[...] * w_ref[...]          # VPU, (1, TK) broadcast over sublanes
    s = jnp.sum(p, axis=-1)              # XLU lane reduction -> (TB,)
    acc_ref[...] += s.reshape(1, -1)     # sublane->lane relayout into (1, TB)

    @pl.when(k == pl.num_programs(1) - 1)
    def _():
        o_ref[...] = (acc_ref[...] + b_ref[0]).astype(o_ref.dtype)


def _round_up(v, m):
    return ((v + m - 1) // m) * m


def _vmem_budget_and_limit():
    """Generation-aware VMEM budget for the double-buffered x tile."""
    try:
        cap = int(pltpu.get_tpu_info().vmem_capacity_bytes)
    except Exception:
        cap = 64 * 1024 * 1024  # conservative: v7x physical VMEM per TC
    # v5e/v6e (128 MiB) -> limit 64 MiB, x budget 48 MiB
    # v7x    (64 MiB)  -> limit 32 MiB, x budget 24 MiB
    vmem_limit = min(cap // 2, 64 * 1024 * 1024)
    x_budget = int(vmem_limit * 0.75)
    return x_budget, vmem_limit


def _pick_tiles(B, D, *, x_budget_bytes, min_batch_steps=2):
    """Byte-derived (TB, TK) tiles plus padded extents (B_pad, D_pad)."""
    # --- feature (K) tile ---------------------------------------------------
    TK_CAP = 2048
    if D <= TK_CAP:
        # Single K step; a full-extent last dim bypasses the 128 constraint.
        TK, D_pad = D, D
    else:
        D_pad = _round_up(D, _LANE)
        TK = _LANE
        for cand in range((min(TK_CAP, D_pad) // _LANE) * _LANE, _LANE - 1, -_LANE):
            if D_pad % cand == 0:
                TK = cand
                break

    # --- batch tile (lanes of the output row) -------------------------------
    b_ceil = _round_up(B, _LANE)
    tb_budget = x_budget_bytes // (2 * TK * 4)          # double-buffered x tile
    TB = max(_LANE, (tb_budget // _LANE) * _LANE)
    TB = min(TB, b_ceil)
    # v7x megacore: keep >= min_batch_steps batch tiles when B allows, so the
    # "parallel" batch axis actually shards across both TensorCores.
    if min_batch_steps > 1:
        tb_for_steps = ((b_ceil // min_batch_steps) // _LANE) * _LANE
        if tb_for_steps >= _LANE:
            TB = min(TB, tb_for_steps)

    B_pad = _round_up(B, TB)
    return TB, TK, B_pad, D_pad


def mock_model_forward(x, weight, bias):
    """x: (B, A, L) f32; weight: (1, A*L) f32; bias: (1,) f32. Returns (B, 1)."""
    B = x.shape[0]
    x_flat = x.reshape(B, -1)            # glue: flatten(start_dim=1)
    D = x_flat.shape[1]

    x_budget, vmem_limit = _vmem_budget_and_limit()
    TB, TK, B_pad, D_pad = _pick_tiles(B, D, x_budget_bytes=x_budget,
                                       min_batch_steps=2)

    # Zero-pad to tile multiples (zero rows/cols contribute nothing to the sum).
    if B_pad != B or D_pad != D:
        x_flat = jnp.pad(x_flat, ((0, B_pad - B), (0, D_pad - D)))
    w = weight if D_pad == D else jnp.pad(weight, ((0, 0), (0, D_pad - D)))

    grid = (B_pad // TB, D_pad // TK)

    cost = pl.CostEstimate(
        flops=2 * B_pad * D_pad,
        transcendentals=0,
        bytes_accessed=4 * (B_pad * D_pad + D_pad * grid[0] + B_pad),
    )

    out_row = pl.pallas_call(
        _rowsum_linear_kernel,
        out_shape=jax.ShapeDtypeStruct((1, B_pad), jnp.float32),
        grid_spec=pltpu.PrefetchScalarGridSpec(
            num_scalar_prefetch=0,
            grid=grid,
            in_specs=[
                # bias: whole (1,) array in SMEM, no per-step VMEM DMA.
                pl.BlockSpec(memory_space=pltpu.MemorySpace.SMEM),
                # x: one (TB, TK) tile per grid step (auto-pipelined).
                pl.BlockSpec((TB, TK), lambda i, k: (i, k)),
                # weight: (1, TK) row slice, same across batch tiles.
                pl.BlockSpec((1, TK), lambda i, k: (0, k)),
            ],
            # lane-dense output row, resident across the K (reduction) axis.
            out_specs=pl.BlockSpec((1, TB), lambda i, k: (0, i)),
            scratch_shapes=[pltpu.VMEM((1, TB), jnp.float32)],
        ),
        compiler_params=pltpu.CompilerParams(
            dimension_semantics=("parallel", "arbitrary"),
            vmem_limit_bytes=vmem_limit,
        ),
        cost_estimate=cost,
    )(bias, x_flat, w)

    # (1, B_pad) row -> (B, 1) column, matching nn.Linear(A*L, 1).
    return out_row[0, :B].reshape(B, 1)


if __name__ == "__main__":
    A, L = 4, 8          # small shapes implied by the module's __init__
    B = 2

    key = jax.random.PRNGKey(0)
    x = jax.random.normal(key, (B, A, L), dtype=jnp.float32)

    # Deterministic parameter init matching torch.nn.init.ones_/zeros_.
    weight = jnp.ones((1, A * L), dtype=jnp.float32)
    bias = jnp.zeros((1,), dtype=jnp.float32)

    out = mock_model_forward(x, weight, bias)
    out = jax.block_until_ready(out)

    # Reference: Linear with all-ones weight and zero bias == row sum.
    ref = jnp.sum(x.reshape(B, -1), axis=1, keepdims=True)
    assert out.shape == (B, 1)
    assert jnp.allclose(out, ref, atol=1e-5, rtol=1e-5)

    print("KERNEL_OK")
</pallas_src>

<mosaic_0001>
module attributes {stable_mosaic.version = 11 : i64} {
  func.func @_rowsum_linear_kernel(%arg0: i32, %arg1: i32, %arg2: memref<1xf32, #tpu.memory_space<smem>>, %arg3: memref<128x32xf32, #tpu.memory_space<vmem>>, %arg4: memref<1x32xf32, #tpu.memory_space<vmem>>, %arg5: memref<1x128xf32, #tpu.memory_space<vmem>>, %arg6: memref<1x128xf32, #tpu.memory_space<vmem>>) attributes {dimension_semantics = [#tpu.dimension_semantics<parallel>, #tpu.dimension_semantics<arbitrary>], iteration_bounds = array<i64: 1, 1>, scalar_prefetch = 0 : i64, scratch_operands = 1 : i64, tpu.core_type = #tpu.core_type<tc>, window_params = [{transform_indices = @transform_0, window_bounds = array<i64: 1>}, {transform_indices = @transform_1, window_bounds = array<i64: 128, 32>}, {transform_indices = @transform_2, window_bounds = array<i64: 1, 32>}, {transform_indices = @transform_3, window_bounds = array<i64: 1, 128>}]} {
    %c0_i32 = arith.constant 0 : i32
    %0 = arith.cmpi eq, %arg1, %c0_i32 : i32
    %1 = arith.extui %0 : i1 to i32
    %c0_i32_0 = arith.constant 0 : i32
    %2 = arith.cmpi ne, %1, %c0_i32_0 : i32
    scf.if %2 {
      %cst_10 = arith.constant 0.000000e+00 : f32
      %15 = vector.broadcast %cst_10 : f32 to vector<1x128xf32>
      %c0_11 = arith.constant 0 : index
      %c0_12 = arith.constant 0 : index
      %16 = vector.load %arg6[%c0_11, %c0_12] : memref<1x128xf32, #tpu.memory_space<vmem>>, vector<1x128xf32>
      tpu.vector_store %arg6[%c0_11, %c0_12], %15 {strides = array<i32>} : memref<1x128xf32, #tpu.memory_space<vmem>>, vector<1x128xf32>,
    } else {
    }
    %c0 = arith.constant 0 : index
    %c0_1 = arith.constant 0 : index
    %3 = vector.load %arg3[%c0, %c0_1] : memref<128x32xf32, #tpu.memory_space<vmem>>, vector<128x32xf32>
    %c0_2 = arith.constant 0 : index
    %c0_3 = arith.constant 0 : index
    %4 = vector.load %arg4[%c0_2, %c0_3] : memref<1x32xf32, #tpu.memory_space<vmem>>, vector<1x32xf32>
    %5 = vector.broadcast %4 : vector<1x32xf32> to vector<128x32xf32>
    %6 = arith.mulf %3, %5 : vector<128x32xf32>
    %cst = arith.constant dense<0.000000e+00> : vector<128xf32>
    %7 = vector.multi_reduction <add>, %6, %cst [1] : vector<128x32xf32> to vector<128xf32>
    %c0_4 = arith.constant 0 : index
    %c0_5 = arith.constant 0 : index
    %8 = vector.load %arg6[%c0_4, %c0_5] : memref<1x128xf32, #tpu.memory_space<vmem>>, vector<1x128xf32>
    %9 = vector.shape_cast %7 : vector<128xf32> to vector<1x128xf32>
    %10 = arith.addf %8, %9 : vector<1x128xf32>
    %c0_6 = arith.constant 0 : index
    %c0_7 = arith.constant 0 : index
    %11 = vector.load %arg6[%c0_6, %c0_7] : memref<1x128xf32, #tpu.memory_space<vmem>>, vector<1x128xf32>
    tpu.vector_store %arg6[%c0_6, %c0_7], %10 {strides = array<i32>} : memref<1x128xf32, #tpu.memory_space<vmem>>, vector<1x128xf32>,
    %c0_i32_8 = arith.constant 0 : i32
    %12 = arith.cmpi eq, %arg1, %c0_i32_8 : i32
    %13 = arith.extui %12 : i1 to i32
    %c0_i32_9 = arith.constant 0 : i32
    %14 = arith.cmpi ne, %13, %c0_i32_9 : i32
    scf.if %14 {
      %c0_10 = arith.constant 0 : index
      %c0_11 = arith.constant 0 : index
      %15 = vector.load %arg6[%c0_10, %c0_11] : memref<1x128xf32, #tpu.memory_space<vmem>>, vector<1x128xf32>
      %c0_12 = arith.constant 0 : index
      %16 = memref.load %arg2[%c0_12] : memref<1xf32, #tpu.memory_space<smem>>
      %17 = vector.broadcast %16 : f32 to vector<1x128xf32>
      %18 = arith.addf %15, %17 : vector<1x128xf32>
      %c0_13 = arith.constant 0 : index
      %c0_14 = arith.constant 0 : index
      %19 = vector.load %arg5[%c0_13, %c0_14] : memref<1x128xf32, #tpu.memory_space<vmem>>, vector<1x128xf32>
      tpu.vector_store %arg5[%c0_13, %c0_14], %18 {strides = array<i32>} : memref<1x128xf32, #tpu.memory_space<vmem>>, vector<1x128xf32>,
    } else {
    }
    return
  }
  func.func @transform_0(%arg0: i32, %arg1: i32) -> i32 {
    %c0_i32 = arith.constant 0 : i32
    %c0_i32_0 = arith.constant 0 : i32
    return %c0_i32 : i32
  }
  func.func @transform_1(%arg0: i32, %arg1: i32) -> (i32, i32) {
    %c0_i32 = arith.constant 0 : i32
    return %arg0, %arg1 : i32, i32
  }
  func.func @transform_2(%arg0: i32, %arg1: i32) -> (i32, i32) {
    %c0_i32 = arith.constant 0 : i32
    %c0_i32_0 = arith.constant 0 : i32
    return %c0_i32, %arg1 : i32, i32
  }
  func.func @transform_3(%arg0: i32, %arg1: i32) -> (i32, i32) {
    %c0_i32 = arith.constant 0 : i32
    %c0_i32_0 = arith.constant 0 : i32
    return %c0_i32, %arg0 : i32, i32
  }
}

</mosaic_0001>

<bundles_post_ra>
// kernel: tpu_custom_call.1
= control target key start
LH: loop header
LB: loop body
LE: loop exit
PB: predicated region body
PF: predicated region fallthrough
CT: control target
= control target key end

     0   :  { %vm60_vm0 = vcmask 261120   ;;  %s2067_s0 = inlined_call_operand.<no memory space> [shape: f32[1], index: 0, kind: input, shape index: {}]   ;;  %s2068_s1 = inlined_call_operand.vmem [shape: f32[128,32], index: 1, kind: input, shape index: {}]   ;;  %s2069_s2 = inlined_call_operand.vmem [shape: f32[1,32], index: 2, kind: input, shape index: {}]   ;;  %s2070_s3 = inlined_call_operand.hbm [shape: f32[1,128], index: 3, kind: output, shape index: {}]  }
   0x1   :  { %v21_v0 = vld [vmem:[%s2068_s1] sm:$0xff]  ;;  %v23_v2 = vld [vmem:[%s2068_s1 + $0x10] sm:$0xff]  ;;  %v22_v5 = vld [vmem:[%s2068_s1 + $0x8] sm:$0xff] }
   0x2   :  { %v1620_v1 = vld [vmem:[%s2069_s2] ss:$0 sm:$0xff]  ;;  %v24_v6 = vld [vmem:[%s2068_s1 + $0x18] sm:$0xff]  ;;  %v26_v9 = vld [vmem:[%s2068_s1 + $0x28] sm:$0xff] }
   0x3   :  { %v44_v3 = vmul.f32 %v1620_v1, %v21_v0  ;;  %v46_v4 = vmul.f32 %v1620_v1, %v23_v2  ;;  %v45_v7 = vmul.f32 %v1620_v1, %v22_v5  ;;  %v47_v8 = vmul.f32 %v1620_v1, %v24_v6  ;;  %v25_v10 = vld [vmem:[%s2068_s1 + $0x20] sm:$0xff] }
   0x4   :  { %v49_v15 = vmul.f32 %v1620_v1, %v26_v9  ;;  %v48_v16 = vmul.f32 %v1620_v1, %v25_v10 }
   0x5   :  { %v61_v11 = vsel %vm60_vm0, %v44_v3, 0.0  ;;  %v67_v12 = vsel %vm60_vm0, %v46_v4, 0.0  ;;  %v64_v13 = vsel %vm60_vm0, %v45_v7, 0.0  ;;  %v70_v14 = vsel %vm60_vm0, %v47_v8, 0.0 }
   0x6   :  { %62 = vadd.xlane.f32.xlu0 %v61_v11  ;;  %68 = vadd.xlane.f32.xlu1 %v67_v12 }
   0x7   :  { %9 = vsyncpa [#allocation5], 0  ;;  %v28_v17 = vld [vmem:[%s2068_s1 + $0x38] sm:$0xff]  ;;  %v27_v18 = vld [vmem:[%s2068_s1 + $0x30] sm:$0xff]  ;;  %v76_v19 = vsel %vm60_vm0, %v49_v15, 0.0  ;;  %v73_v21 = vsel %vm60_vm0, %v48_v16, 0.0  ;;  %v126_v50 = vlaneseq }
   0x8   :  { %v51_v20 = vmul.f32 %v1620_v1, %v28_v17  ;;  %v50_v22 = vmul.f32 %v1620_v1, %v27_v18  ;;  %v30_v23 = vld [vmem:[%s2068_s1 + $0x48] sm:$0xff]  ;;  %v29_v24 = vld [vmem:[%s2068_s1 + $0x40] sm:$0xff]  ;;  %v32_v29 = vld [vmem:[%s2068_s1 + $0x58] sm:$0xff]  ;;  %v1649_v43 = vmov 0   ;;  %v1650_v51 = vmov 1966171168  }
   0x9   :  { %v53_v26 = vmul.f32 %v1620_v1, %v30_v23  ;;  %v52_v28 = vmul.f32 %v1620_v1, %v29_v24  ;;  %v31_v30 = vld [vmem:[%s2068_s1 + $0x50] sm:$0xff]  ;;  %v55_v32 = vmul.f32 %v1620_v1, %v32_v29  ;;  %v34_v33 = vld [vmem:[%s2068_s1 + $0x68] sm:$0xff]  ;;  %v33_v36 = vld [vmem:[%s2068_s1 + $0x60] sm:$0xff]  ;;  %1625 = vset.pattern.permute.xlu0 %v1649_v43  ;;  %1626 = vset.pattern.permute.xlu1 %v1649_v43  ;;  %v643_v52 = vunpack.c.l.s4 %v1650_v51  ;;  %s1652_s19 = smov [#allocation4]  }
   0xa   :  { %65 = vadd.xlane.f32.xlu0 %v64_v13  ;;  %71 = vadd.xlane.f32.xlu1 %v70_v14  ;;  %v82_v25 = vsel %vm60_vm0, %v51_v20, 0.0  ;;  %v79_v27 = vsel %vm60_vm0, %v50_v22, 0.0  ;;  %v54_v35 = vmul.f32 %v1620_v1, %v31_v30  ;;  %v57_v37 = vmul.f32 %v1620_v1, %v34_v33  ;;  %v36_v41 = vld [vmem:[%s2068_s1 + $0x78] sm:$0xff]  ;;  %v35_v42 = vld [vmem:[%s2068_s1 + $0x70] sm:$0xff]  ;;  %s1612_s20 = sshll.u32 %s1652_s19, 4  ;;  %s1613_s20 = int_to_ptr.vmem [resolvable:$true] %s1612_s20 }
   0xb   :  { %v88_v31 = vsel %vm60_vm0, %v53_v26, 0.0  ;;  %v85_v34 = vsel %vm60_vm0, %v52_v28, 0.0  ;;  %v94_v38 = vsel %vm60_vm0, %v55_v32, 0.0  ;;  %v56_v40 = vmul.f32 %v1620_v1, %v33_v36  ;;  %s1627_s21 = scalar_lea.vmem %s1613_s20, 16  ;;  %s1631_s22 = scalar_lea.vmem %s1613_s20, 32 }
   0xc   :  { %v91_v39 = vsel %vm60_vm0, %v54_v35, 0.0  ;;  %v100_v44 = vsel %vm60_vm0, %v57_v37, 0.0  ;;  %v59_v45 = vmul.f32 %v1620_v1, %v36_v41  ;;  %v58_v47 = vmul.f32 %v1620_v1, %v35_v42  ;;  %p1628_p0 = scmp.ne.s32.totalorder %s1613_s20, %s1627_s21  ;;  %p1632_p1 = scmp.lt.s32.totalorder %s1613_s20, %s1613_s20 }
   0xd   :  { %v97_v46 = vsel %vm60_vm0, %v56_v40, 0.0  ;;  %v1741_v53 = vshrl.u32 %v126_v50, 7  ;;  %v644_v54 = vunpack.c.0.s8 %v643_v52  ;;  %vm1481_vm1 = vcmask 130112   ;;  %p1633_p2 = scmp.lt.s32.totalorder %s1631_s22, %s1627_s21 }
   0xe   :  { %77 = vadd.xlane.f32.xlu1 %v76_v19  ;;  %74 = vadd.xlane.f32.xlu0 %v73_v21  ;;  %v106_v48 = vsel %vm60_vm0, %v59_v45, 0.0  ;;  %v103_v49 = vsel %vm60_vm0, %v58_v47, 0.0  ;;  %vm1488_vm2 = vcmask 195712   ;;  %vm1495_vm3 = vcmask 261312  }
   0xf   :  { %v1744_v55 = vsub.s32 0, %v1741_v53  ;;  %v1747_v56 = vsub.s32 1, %v1741_v53  ;;  %v1750_v57 = vsub.s32 2, %v1741_v53  ;;  %v1753_v58 = vsub.s32 3, %v1741_v53  ;;  %p1634_p3 = por %p1633_p2, %p1632_p1 }
  0x10   :  { %v1756_v59 = vsub.s32 4, %v1741_v53  ;;  %v1759_v60 = vsub.s32 5, %v1741_v53  ;;  %v1762_v61 = vsub.s32 6, %v1741_v53  ;;  %v1765_v62 = vsub.s32 7, %v1741_v53 }
  0x11   :  { %v1768_v1 = vsub.s32 %v644_v54, %v1741_v53  ;;  %vm1502_vm4 = vcmask 326912   ;;  %vm1509_vm5 = vcmask 392512   ;;  %vm1516_vm6 = vcmask 458112   ;;  %p1635_p4 = pnand %p1634_p3, %p1628_p0 }
  0x12   :  { %83 = vadd.xlane.f32.xlu1 %v82_v25  ;;  %80 = vadd.xlane.f32.xlu0 %v79_v27  ;;  %vm1523_vm7 = vcmask 523712   ;;  %vm1530_vm8 = vcmask 589312   ;;  %vm1537_vm9 = vcmask 654912   ;;  %vm1544_vm10 = vcmask 720512  }
  0x13   :  { %vm1551_vm11 = vcmask 786112   ;;  %vm1558_vm12 = vcmask 851712   ;;  %vm1565_vm13 = vcmask 917312   ;;  %vm1572_vm14 = vcmask 982912  }
  0x14   :  { %vm1579_vm15 = vcmask 1048512  }
  0x16   :  { %89 = vadd.xlane.f32.xlu1 %v88_v31  ;;  %86 = vadd.xlane.f32.xlu0 %v85_v34 }
  0x1a   :  { %95 = vadd.xlane.f32.xlu1 %v94_v38  ;;  %92 = vadd.xlane.f32.xlu0 %v91_v39 }
  0x1e   :  { %101 = vadd.xlane.f32.xlu1 %v100_v44  ;;  %98 = vadd.xlane.f32.xlu0 %v97_v46 }
  0x22   :  { %107 = vadd.xlane.f32.xlu1 %v106_v48  ;;  %104 = vadd.xlane.f32.xlu0 %v103_v49 }
  0x8f   :  { %v63_v63 = vpop.xlane.xlu0 %62  ;;  %v69_v0 = vpop.xlane.xlu1 %68 }
  0x90   :  { %v129_v2 = vrot.slane %v63_v63, %v1744_v55  ;;  %v133_v3 = vrot.slane %v63_v63, %v1747_v56  ;;  %v137_v4 = vrot.slane %v63_v63, %v1750_v57  ;;  %v141_v5 = vrot.slane %v63_v63, %v1753_v58 }
  0x91   :  { %v145_v6 = vrot.slane %v63_v63, %v1756_v59  ;;  %v149_v7 = vrot.slane %v63_v63, %v1759_v60  ;;  %v153_v8 = vrot.slane %v63_v63, %v1762_v61  ;;  %v157_v9 = vrot.slane %v63_v63, %v1765_v62 }
  0x92   :  { %v638_v10 = vcombine.low %v129_v2, %v133_v3  ;;  %v639_v11 = vcombine.low %v137_v4, %v141_v5  ;;  %v193_v12 = vrot.slane %v69_v0, %v1744_v55  ;;  %v197_v13 = vrot.slane %v69_v0, %v1747_v56 }
  0x93   :  { %v66_v14 = vpop.xlane.xlu0 %65  ;;  %v1780_v15 = vpop.xlane.xlu1 %71  ;;  %v640_v16 = vcombine.low %v145_v6, %v149_v7  ;;  %v641_v17 = vcombine.low %v153_v8, %v157_v9  ;;  %v201_v18 = vrot.slane %v69_v0, %v1750_v57  ;;  %v205_v19 = vrot.slane %v69_v0, %v1753_v58 }
  0x94   :  { %v648_v20 = vrot.slane %v638_v10, %v1768_v1  ;;  %v655_v21 = vrot.slane %v639_v11, %v1768_v1  ;;  %v161_v22 = vrot.slane %v66_v14, %v1744_v55  ;;  %v165_v23 = vrot.slane %v66_v14, %v1747_v56 }
  0x95   :  { %v662_v24 = vrot.slane %v640_v16, %v1768_v1  ;;  %v669_v25 = vrot.slane %v641_v17, %v1768_v1  ;;  %v169_v26 = vrot.slane %v66_v14, %v1750_v57  ;;  %v173_v27 = vrot.slane %v66_v14, %v1753_v58 }
  0x96   :  { %v670_v28 = vcombine.low %v648_v20, %v655_v21  ;;  %v177_v29 = vrot.slane %v66_v14, %v1756_v59  ;;  %v181_v30 = vrot.slane %v66_v14, %v1759_v60  ;;  %v185_v31 = vrot.slane %v66_v14, %v1762_v61 }
  0x97   :  { %v1795_v32 = vpop.xlane.xlu1 %77  ;;  %v671_v33 = vcombine.low %v662_v24, %v669_v25  ;;  %v189_v34 = vrot.slane %v66_v14, %v1765_v62  ;;  %v687_v35 = vcombine.low %v161_v22, %v165_v23  ;;  %v688_v36 = vcombine.low %v169_v26, %v173_v27 }
  0x98   :  { %v678_v37 = vrot.slane %v670_v28, %v1768_v1  ;;  %v689_v38 = vcombine.low %v177_v29, %v181_v30  ;;  %v209_v39 = vrot.slane %v69_v0, %v1756_v59  ;;  %v213_v40 = vrot.slane %v69_v0, %v1759_v60 }
  0x99   :  { %v685_v41 = vrot.slane %v671_v33, %v1768_v1  ;;  %v690_v42 = vcombine.low %v185_v31, %v189_v34  ;;  %v697_v43 = vrot.slane %v687_v35, %v1768_v1  ;;  %v704_v44 = vrot.slane %v688_v36, %v1768_v1 }
  0x9a   :  { %v711_v45 = vrot.slane %v689_v38, %v1768_v1  ;;  %v217_v46 = vrot.slane %v69_v0, %v1762_v61  ;;  %v221_v47 = vrot.slane %v69_v0, %v1765_v62  ;;  %v736_v48 = vcombine.low %v193_v12, %v197_v13  ;;  %v75_v13 = vpop.xlane.xlu0 %74 }
  0x9b   :  { %v686_v49 = vcombine.low %v678_v37, %v685_v41  ;;  %v718_v51 = vrot.slane %v690_v42, %v1768_v1  ;;  %v719_v52 = vcombine.low %v697_v43, %v704_v44  ;;  %v737_v54 = vcombine.low %v201_v18, %v205_v19  ;;  %v1811_v5 = vpop.xlane.xlu1 %83 }
  0x9c   :  { %v738_v63 = vcombine.low %v209_v39, %v213_v40  ;;  %v739_v2 = vcombine.low %v217_v46, %v221_v47  ;;  %v746_v3 = vrot.slane %v736_v48, %v1768_v1  ;;  %v225_v4 = vrot.slane %v1780_v15, %v1744_v55 }
  0x9d   :  { %1423 = vperm.xlu0 %1625, %v686_v49   ;;  %v720_v6 = vcombine.low %v711_v45, %v718_v51  ;;  %v727_v7 = vrot.slane %v719_v52, %v1768_v1  ;;  %v753_v0 = vrot.slane %v737_v54, %v1768_v1  ;;  %v229_v8 = vrot.slane %v1780_v15, %v1747_v56 }
  0x9e   :  { %v760_v9 = vrot.slane %v738_v63, %v1768_v1  ;;  %v767_v10 = vrot.slane %v739_v2, %v1768_v1  ;;  %v233_v11 = vrot.slane %v1780_v15, %v1750_v57  ;;  %v237_v12 = vrot.slane %v1780_v15, %v1753_v58 }
  0x9f   :  { %v734_v14 = vrot.slane %v720_v6, %v1768_v1  ;;  %v768_v16 = vcombine.low %v746_v3, %v753_v0  ;;  %v241_v17 = vrot.slane %v1780_v15, %v1756_v59  ;;  %v245_v18 = vrot.slane %v1780_v15, %v1759_v60  ;;  %v90_v31 = vpop.xlane.xlu1 %89 }
  0xa0   :  { %v769_v19 = vcombine.low %v760_v9, %v767_v10  ;;  %v249_v20 = vrot.slane %v1780_v15, %v1762_v61  ;;  %v253_v21 = vrot.slane %v1780_v15, %v1765_v62  ;;  %v785_v22 = vcombine.low %v225_v4, %v229_v8 }
  0xa1   :  { %v735_v23 = vcombine.low %v727_v7, %v734_v14  ;;  %v776_v24 = vrot.slane %v768_v16, %v1768_v1  ;;  %v786_v25 = vcombine.low %v233_v11, %v237_v12  ;;  %v787_v26 = vcombine.low %v241_v17, %v245_v18 }
  0xa2   :  { %v783_v27 = vrot.slane %v769_v19, %v1768_v1  ;;  %v788_v28 = vcombine.low %v249_v20, %v253_v21  ;;  %v795_v29 = vrot.slane %v785_v22, %v1768_v1  ;;  %v257_v30 = vrot.slane %v75_v13, %v1744_v55 }
  0xa3   :  { %1426 = vperm.xlu1 %1626, %v735_v23   ;;  %v802_v33 = vrot.slane %v786_v25, %v1768_v1  ;;  %v809_v34 = vrot.slane %v787_v26, %v1768_v1  ;;  %v261_v15 = vrot.slane %v75_v13, %v1747_v56  ;;  %v265_v35 = vrot.slane %v75_v13, %v1750_v57  ;;  %v96_v25 = vpop.xlane.xlu1 %95 }
  0xa4   :  { %v784_v36 = vcombine.low %v776_v24, %v783_v27  ;;  %v816_v37 = vrot.slane %v788_v28, %v1768_v1  ;;  %v269_v38 = vrot.slane %v75_v13, %v1753_v58  ;;  %v273_v39 = vrot.slane %v75_v13, %v1756_v59 }
  0xa5   :  { %v817_v40 = vcombine.low %v795_v29, %v802_v33  ;;  %v277_v41 = vrot.slane %v75_v13, %v1759_v60  ;;  %v281_v42 = vrot.slane %v75_v13, %v1762_v61  ;;  %v285_v43 = vrot.slane %v75_v13, %v1765_v62 }
  0xa6   :  { %v818_v44 = vcombine.low %v809_v34, %v816_v37  ;;  %v834_v45 = vcombine.low %v257_v30, %v261_v15  ;;  %v835_v46 = vcombine.low %v265_v35, %v269_v38  ;;  %v417_v47 = vrot.slane %v90_v31, %v1744_v55 }
  0xa7   :  { %1429 = vperm.xlu1 %1626, %v784_v36   ;;  %v825_v48 = vrot.slane %v817_v40, %v1768_v1  ;;  %v836_v49 = vcombine.low %v273_v39, %v277_v41  ;;  %v837_v51 = vcombine.low %v281_v42, %v285_v43  ;;  %v421_v52 = vrot.slane %v90_v31, %v1747_v56 }
  0xa8   :  { %v832_v54 = vrot.slane %v818_v44, %v1768_v1  ;;  %v844_v63 = vrot.slane %v834_v45, %v1768_v1  ;;  %v851_v2 = vrot.slane %v835_v46, %v1768_v1  ;;  %v425_v3 = vrot.slane %v90_v31, %v1750_v57 }
  0xa9   :  { %v858_v4 = vrot.slane %v836_v49, %v1768_v1  ;;  %v865_v6 = vrot.slane %v837_v51, %v1768_v1  ;;  %v429_v7 = vrot.slane %v90_v31, %v1753_v58  ;;  %v433_v0 = vrot.slane %v90_v31, %v1756_v59  ;;  %v81_v49 = vpop.xlane.xlu0 %80 }
  0xaa   :  { %v833_v8 = vcombine.low %v825_v48, %v832_v54  ;;  %v866_v9 = vcombine.low %v844_v63, %v851_v2  ;;  %v437_v10 = vrot.slane %v90_v31, %v1759_v60  ;;  %v441_v11 = vrot.slane %v90_v31, %v1762_v61 }
  0xab   :  { %v867_v12 = vcombine.low %v858_v4, %v865_v6  ;;  %v445_v13 = vrot.slane %v90_v31, %v1765_v62  ;;  %v1079_v14 = vcombine.low %v417_v47, %v421_v52  ;;  %v1080_v16 = vcombine.low %v425_v3, %v429_v7 }
  0xac   :  { %1432 = vperm.xlu1 %1626, %v833_v8   ;;  %v874_v17 = vrot.slane %v866_v9, %v1768_v1  ;;  %v1081_v18 = vcombine.low %v433_v0, %v437_v10  ;;  %v289_v19 = vrot.slane %v1795_v32, %v1744_v55  ;;  %v293_v20 = vrot.slane %v1795_v32, %v1747_v56 }
  0xad   :  { %v881_v21 = vrot.slane %v867_v12, %v1768_v1  ;;  %v1082_v22 = vcombine.low %v441_v11, %v445_v13  ;;  %v1089_v23 = vrot.slane %v1079_v14, %v1768_v1  ;;  %v1096_v24 = vrot.slane %v1080_v16, %v1768_v1 }
  0xae   :  { %v1103_v26 = vrot.slane %v1081_v18, %v1768_v1  ;;  %v297_v27 = vrot.slane %v1795_v32, %v1750_v57  ;;  %v301_v28 = vrot.slane %v1795_v32, %v1753_v58  ;;  %v305_v29 = vrot.slane %v1795_v32, %v1756_v59 }
  0xaf   :  { %v882_v30 = vcombine.low %v874_v17, %v881_v21  ;;  %v1110_v31 = vrot.slane %v1082_v22, %v1768_v1  ;;  %v1111_v33 = vcombine.low %v1089_v23, %v1096_v24  ;;  %v309_v34 = vrot.slane %v1795_v32, %v1759_v60 }
  0xb0   :  { %v313_v15 = vrot.slane %v1795_v32, %v1762_v61  ;;  %v317_v35 = vrot.slane %v1795_v32, %v1765_v62  ;;  %v883_v36 = vcombine.low %v289_v19, %v293_v20  ;;  %v884_v37 = vcombine.low %v297_v27, %v301_v28  ;;  %v102_v19 = vpop.xlane.xlu1 %101 }
  0xb1   :  { %1435 = vperm.xlu1 %1626, %v882_v30   ;;  %v1112_v38 = vcombine.low %v1103_v26, %v1110_v31  ;;  %v1119_v39 = vrot.slane %v1111_v33, %v1768_v1  ;;  %v885_v40 = vcombine.low %v305_v29, %v309_v34  ;;  %v481_v41 = vrot.slane %v96_v25, %v1744_v55 }
  0xb2   :  { %v886_v42 = vcombine.low %v313_v15, %v317_v35  ;;  %v893_v43 = vrot.slane %v883_v36, %v1768_v1  ;;  %v900_v44 = vrot.slane %v884_v37, %v1768_v1  ;;  %v485_v45 = vrot.slane %v96_v25, %v1747_v56 }
  0xb3   :  { %v1126_v46 = vrot.slane %v1112_v38, %v1768_v1  ;;  %v907_v32 = vrot.slane %v885_v40, %v1768_v1  ;;  %v489_v47 = vrot.slane %v96_v25, %v1750_v57  ;;  %v493_v48 = vrot.slane %v96_v25, %v1753_v58 }
  0xb4   :  { %v914_v51 = vrot.slane %v886_v42, %v1768_v1  ;;  %v915_v52 = vcombine.low %v893_v43, %v900_v44  ;;  %v497_v54 = vrot.slane %v96_v25, %v1756_v59  ;;  %v501_v63 = vrot.slane %v96_v25, %v1759_v60 }
  0xb5   :  { %v1127_v2 = vcombine.low %v1119_v39, %v1126_v46  ;;  %v505_v3 = vrot.slane %v96_v25, %v1762_v61  ;;  %v509_v4 = vrot.slane %v96_v25, %v1765_v62  ;;  %v1177_v6 = vcombine.low %v481_v41, %v485_v45 }
  0xb6   :  { %v916_v7 = vcombine.low %v907_v32, %v914_v51  ;;  %v923_v0 = vrot.slane %v915_v52, %v1768_v1  ;;  %v1178_v8 = vcombine.low %v489_v47, %v493_v48  ;;  %v1179_v9 = vcombine.low %v497_v54, %v501_v63 }
  0xb7   :  { %1450 = vperm.xlu0 %1625, %v1127_v2   ;;  %v1180_v10 = vcombine.low %v505_v3, %v509_v4  ;;  %v1187_v11 = vrot.slane %v1177_v6, %v1768_v1  ;;  %v321_v12 = vrot.slane %v81_v49, %v1744_v55  ;;  %v325_v13 = vrot.slane %v81_v49, %v1747_v56 }
  0xb8   :  { %v930_v14 = vrot.slane %v916_v7, %v1768_v1  ;;  %v1194_v16 = vrot.slane %v1178_v8, %v1768_v1  ;;  %v1201_v17 = vrot.slane %v1179_v9, %v1768_v1  ;;  %v329_v18 = vrot.slane %v81_v49, %v1750_v57 }
  0xb9   :  { %v1208_v20 = vrot.slane %v1180_v10, %v1768_v1  ;;  %v333_v21 = vrot.slane %v81_v49, %v1753_v58  ;;  %v337_v22 = vrot.slane %v81_v49, %v1756_v59  ;;  %v341_v23 = vrot.slane %v81_v49, %v1759_v60 }
  0xba   :  { %v931_v24 = vcombine.low %v923_v0, %v930_v14  ;;  %v1209_v25 = vcombine.low %v1187_v11, %v1194_v16  ;;  %v345_v26 = vrot.slane %v81_v49, %v1762_v61  ;;  %v349_v27 = vrot.slane %v81_v49, %v1765_v62  ;;  %v108_v0 = vpop.xlane.xlu1 %107 }
  0xbb   :  { %v1210_v28 = vcombine.low %v1201_v17, %v1208_v20  ;;  %v932_v29 = vcombine.low %v321_v12, %v325_v13  ;;  %v933_v30 = vcombine.low %v329_v18, %v333_v21  ;;  %v934_v31 = vcombine.low %v337_v22, %v341_v23  ;;  %v87_v21 = vpop.xlane.xlu0 %86 }
  0xbc   :  { %1438 = vperm.xlu1 %1626, %v931_v24   ;;  %v1217_v33 = vrot.slane %v1209_v25, %v1768_v1  ;;  %v935_v34 = vcombine.low %v345_v26, %v349_v27  ;;  %v545_v15 = vrot.slane %v102_v19, %v1744_v55  ;;  %v549_v35 = vrot.slane %v102_v19, %v1747_v56 }
  0xbd   :  { %v1224_v36 = vrot.slane %v1210_v28, %v1768_v1  ;;  %v942_v37 = vrot.slane %v932_v29, %v1768_v1  ;;  %v949_v38 = vrot.slane %v933_v30, %v1768_v1  ;;  %v956_v39 = vrot.slane %v934_v31, %v1768_v1 }
  0xbe   :  { %v963_v40 = vrot.slane %v935_v34, %v1768_v1  ;;  %v553_v41 = vrot.slane %v102_v19, %v1750_v57  ;;  %v557_v42 = vrot.slane %v102_v19, %v1753_v58  ;;  %v561_v43 = vrot.slane %v102_v19, %v1756_v59 }
  0xbf   :  { %v1225_v44 = vcombine.low %v1217_v33, %v1224_v36  ;;  %v964_v45 = vcombine.low %v942_v37, %v949_v38  ;;  %v565_v46 = vrot.slane %v102_v19, %v1759_v60  ;;  %v569_v32 = vrot.slane %v102_v19, %v1762_v61 }
  0xc0   :  { %v965_v47 = vcombine.low %v956_v39, %v963_v40  ;;  %v573_v48 = vrot.slane %v102_v19, %v1765_v62  ;;  %v1275_v49 = vcombine.low %v545_v15, %v549_v35  ;;  %v1276_v51 = vcombine.low %v553_v41, %v557_v42 }
  0xc1   :  { %1456 = vperm.xlu0 %1625, %v1225_v44   ;;  %v972_v52 = vrot.slane %v964_v45, %v1768_v1  ;;  %v1277_v54 = vcombine.low %v561_v43, %v565_v46  ;;  %v353_v63 = vrot.slane %v1811_v5, %v1744_v55  ;;  %v357_v2 = vrot.slane %v1811_v5, %v1747_v56  ;;  %v93_v45 = vpop.xlane.xlu0 %92 }
  0xc2   :  { %v979_v3 = vrot.slane %v965_v47, %v1768_v1  ;;  %v1278_v4 = vcombine.low %v569_v32, %v573_v48  ;;  %v1285_v6 = vrot.slane %v1275_v49, %v1768_v1  ;;  %v1292_v7 = vrot.slane %v1276_v51, %v1768_v1 }
  0xc3   :  { %v1299_v8 = vrot.slane %v1277_v54, %v1768_v1  ;;  %v361_v9 = vrot.slane %v1811_v5, %v1750_v57  ;;  %v365_v10 = vrot.slane %v1811_v5, %v1753_v58  ;;  %v369_v11 = vrot.slane %v1811_v5, %v1756_v59 }
  0xc4   :  { %v980_v12 = vcombine.low %v972_v52, %v979_v3  ;;  %v1306_v13 = vrot.slane %v1278_v4, %v1768_v1  ;;  %v1307_v14 = vcombine.low %v1285_v6, %v1292_v7  ;;  %v373_v16 = vrot.slane %v1811_v5, %v1759_v60 }
  0xc5   :  { %v377_v17 = vrot.slane %v1811_v5, %v1762_v61  ;;  %v381_v18 = vrot.slane %v1811_v5, %v1765_v62  ;;  %v981_v19 = vcombine.low %v353_v63, %v357_v2  ;;  %v982_v20 = vcombine.low %v361_v9, %v365_v10 }
  0xc6   :  { %1441 = vperm.xlu1 %1626, %v980_v12   ;;  %v1308_v22 = vcombine.low %v1299_v8, %v1306_v13  ;;  %v1315_v23 = vrot.slane %v1307_v14, %v1768_v1  ;;  %v983_v24 = vcombine.low %v369_v11, %v373_v16  ;;  %v609_v25 = vrot.slane %v108_v0, %v1744_v55 }
  0xc7   :  { %v984_v26 = vcombine.low %v377_v17, %v381_v18  ;;  %v991_v27 = vrot.slane %v981_v19, %v1768_v1  ;;  %v998_v28 = vrot.slane %v982_v20, %v1768_v1  ;;  %v613_v29 = vrot.slane %v108_v0, %v1747_v56  ;;  %v99_v18 = vpop.xlane.xlu0 %98 }
  0xc8   :  { %v1322_v30 = vrot.slane %v1308_v22, %v1768_v1  ;;  %v1005_v5 = vrot.slane %v983_v24, %v1768_v1  ;;  %v617_v31 = vrot.slane %v108_v0, %v1750_v57  ;;  %v621_v33 = vrot.slane %v108_v0, %v1753_v58 }
  0xc9   :  { %v1012_v34 = vrot.slane %v984_v26, %v1768_v1  ;;  %v1013_v15 = vcombine.low %v991_v27, %v998_v28  ;;  %v625_v35 = vrot.slane %v108_v0, %v1756_v59  ;;  %v629_v36 = vrot.slane %v108_v0, %v1759_v60 }
  0xca   :  { %v1323_v37 = vcombine.low %v1315_v23, %v1322_v30  ;;  %v633_v38 = vrot.slane %v108_v0, %v1762_v61  ;;  %v637_v39 = vrot.slane %v108_v0, %v1765_v62  ;;  %v1373_v40 = vcombine.low %v609_v25, %v613_v29 }
  0xcb   :  { %v1014_v41 = vcombine.low %v1005_v5, %v1012_v34  ;;  %v1021_v42 = vrot.slane %v1013_v15, %v1768_v1  ;;  %v1374_v43 = vcombine.low %v617_v31, %v621_v33  ;;  %v1375_v44 = vcombine.low %v625_v35, %v629_v36 }
  0xcc   :  { %1462 = vperm.xlu0 %1625, %v1323_v37   ;;  %v1376_v46 = vcombine.low %v633_v38, %v637_v39  ;;  %v1383_v32 = vrot.slane %v1373_v40, %v1768_v1  ;;  %v385_v47 = vrot.slane %v87_v21, %v1744_v55  ;;  %v389_v48 = vrot.slane %v87_v21, %v1747_v56 }
  0xcd   :  { %v1028_v49 = vrot.slane %v1014_v41, %v1768_v1  ;;  %v1390_v51 = vrot.slane %v1374_v43, %v1768_v1  ;;  %v1397_v52 = vrot.slane %v1375_v44, %v1768_v1  ;;  %v393_v54 = vrot.slane %v87_v21, %v1750_v57 }
  0xce   :  { %v1404_v63 = vrot.slane %v1376_v46, %v1768_v1  ;;  %v397_v2 = vrot.slane %v87_v21, %v1753_v58  ;;  %v401_v3 = vrot.slane %v87_v21, %v1756_v59  ;;  %v405_v4 = vrot.slane %v87_v21, %v1759_v60 }
  0xcf   :  { %v1029_v6 = vcombine.low %v1021_v42, %v1028_v49  ;;  %v1405_v7 = vcombine.low %v1383_v32, %v1390_v51  ;;  %v409_v0 = vrot.slane %v87_v21, %v1762_v61  ;;  %v413_v8 = vrot.slane %v87_v21, %v1765_v62  ;;  %v105_v42 = vpop.xlane.xlu0 %104 }
  0xd0   :  { %v1406_v9 = vcombine.low %v1397_v52, %v1404_v63  ;;  %v1030_v10 = vcombine.low %v385_v47, %v389_v48  ;;  %v1031_v11 = vcombine.low %v393_v54, %v397_v2  ;;  %v1032_v12 = vcombine.low %v401_v3, %v405_v4 }
  0xd1   :  { %1444 = vperm.xlu1 %1626, %v1029_v6   ;;  %v1413_v13 = vrot.slane %v1405_v7, %v1768_v1  ;;  %v1033_v14 = vcombine.low %v409_v0, %v413_v8  ;;  %v449_v16 = vrot.slane %v93_v45, %v1744_v55  ;;  %v453_v17 = vrot.slane %v93_v45, %v1747_v56 }
  0xd2   :  { %v1420_v19 = vrot.slane %v1406_v9, %v1768_v1  ;;  %v1040_v20 = vrot.slane %v1030_v10, %v1768_v1  ;;  %v1047_v22 = vrot.slane %v1031_v11, %v1768_v1  ;;  %v1054_v21 = vrot.slane %v1032_v12, %v1768_v1 }
  0xd3   :  { %v1061_v23 = vrot.slane %v1033_v14, %v1768_v1  ;;  %v457_v24 = vrot.slane %v93_v45, %v1750_v57  ;;  %v461_v25 = vrot.slane %v93_v45, %v1753_v58  ;;  %v465_v26 = vrot.slane %v93_v45, %v1756_v59 }
  0xd4   :  { %v1421_v27 = vcombine.low %v1413_v13, %v1420_v19  ;;  %v1062_v28 = vcombine.low %v1040_v20, %v1047_v22  ;;  %v469_v29 = vrot.slane %v93_v45, %v1759_v60  ;;  %v473_v30 = vrot.slane %v93_v45, %v1762_v61 }
  0xd5   :  { %v1063_v5 = vcombine.low %v1054_v21, %v1061_v23  ;;  %v477_v31 = vrot.slane %v93_v45, %v1765_v62  ;;  %v1128_v33 = vcombine.low %v449_v16, %v453_v17  ;;  %v1129_v34 = vcombine.low %v457_v24, %v461_v25 }
  0xd6   :  { %1468 = vperm.xlu0 %1625, %v1421_v27   ;;  %v1070_v15 = vrot.slane %v1062_v28, %v1768_v1  ;;  %v1130_v35 = vcombine.low %v465_v26, %v469_v29  ;;  %v513_v36 = vrot.slane %v99_v18, %v1744_v55  ;;  %v517_v37 = vrot.slane %v99_v18, %v1747_v56 }
  0xd7   :  { %v1077_v38 = vrot.slane %v1063_v5, %v1768_v1  ;;  %v1131_v39 = vcombine.low %v473_v30, %v477_v31  ;;  %v1138_v40 = vrot.slane %v1128_v33, %v1768_v1  ;;  %v1145_v41 = vrot.slane %v1129_v34, %v1768_v1 }
  0xd8   :  { %v1152_v43 = vrot.slane %v1130_v35, %v1768_v1  ;;  %v521_v44 = vrot.slane %v99_v18, %v1750_v57  ;;  %v525_v45 = vrot.slane %v99_v18, %v1753_v58  ;;  %v529_v46 = vrot.slane %v99_v18, %v1756_v59 }
  0xd9   :  { %v1078_v32 = vcombine.low %v1070_v15, %v1077_v38  ;;  %v1159_v47 = vrot.slane %v1131_v39, %v1768_v1  ;;  %v1160_v48 = vcombine.low %v1138_v40, %v1145_v41  ;;  %v533_v49 = vrot.slane %v99_v18, %v1759_v60 }
  0xda   :  { %v537_v51 = vrot.slane %v99_v18, %v1762_v61  ;;  %v541_v52 = vrot.slane %v99_v18, %v1765_v62  ;;  %v1226_v54 = vcombine.low %v513_v36, %v517_v37  ;;  %v1227_v63 = vcombine.low %v521_v44, %v525_v45 }
  0xdb   :  { %1447 = vperm.xlu1 %1626, %v1078_v32   ;;  %v1161_v2 = vcombine.low %v1152_v43, %v1159_v47  ;;  %v1168_v3 = vrot.slane %v1160_v48, %v1768_v1  ;;  %v1228_v4 = vcombine.low %v529_v46, %v533_v49  ;;  %v577_v6 = vrot.slane %v105_v42, %v1744_v55 }
  0xdc   :  { %v1229_v7 = vcombine.low %v537_v51, %v541_v52  ;;  %v1236_v0 = vrot.slane %v1226_v54, %v1768_v1  ;;  %v1243_v8 = vrot.slane %v1227_v63, %v1768_v1  ;;  %v581_v9 = vrot.slane %v105_v42, %v1747_v56 }
  0xdd   :  { %v1175_v10 = vrot.slane %v1161_v2, %v1768_v1  ;;  %v1250_v11 = vrot.slane %v1228_v4, %v1768_v1  ;;  %v585_v12 = vrot.slane %v105_v42, %v1750_v57  ;;  %v589_v13 = vrot.slane %v105_v42, %v1753_v58 }
  0xde   :  { %v1257_v14 = vrot.slane %v1229_v7, %v1768_v1  ;;  %v1258_v16 = vcombine.low %v1236_v0, %v1243_v8  ;;  %v593_v55 = vrot.slane %v105_v42, %v1756_v59  ;;  %v597_v17 = vrot.slane %v105_v42, %v1759_v60 }
  0xdf   :  { %v1176_v18 = vcombine.low %v1168_v3, %v1175_v10  ;;  %v601_v19 = vrot.slane %v105_v42, %v1762_v61  ;;  %v605_v56 = vrot.slane %v105_v42, %v1765_v62  ;;  %v1324_v20 = vcombine.low %v577_v6, %v581_v9 }
  0xe0   :  { %v1259_v22 = vcombine.low %v1250_v11, %v1257_v14  ;;  %v1266_v21 = vrot.slane %v1258_v16, %v1768_v1  ;;  %v1325_v23 = vcombine.low %v585_v12, %v589_v13  ;;  %v1326_v57 = vcombine.low %v593_v55, %v597_v17 }
  0xe1   :  { %1453 = vperm.xlu1 %1626, %v1176_v18   ;;  %v1327_v58 = vcombine.low %v601_v19, %v605_v56  ;;  %v1334_v24 = vrot.slane %v1324_v20, %v1768_v1  ;;  %v1651_v5 = vmov 0.0   ;;  %v2025_v36 = vand.u32 127, %v126_v50 }
  0xe2   :  { %v1273_v25 = vrot.slane %v1259_v22, %v1768_v1  ;;  %v1341_v59 = vrot.slane %v1325_v23, %v1768_v1  ;;  %v1348_v60 = vrot.slane %v1326_v57, %v1768_v1  ;;  %20 = vst [vmem:[#allocation2] sm:$0x1] %v1651_v5 }
  0xe3   :  { %v1355_v61 = vrot.slane %v1327_v58, %v1768_v1  ;;  %v1476_v37 = vadd.s32 4294967288, %v2025_v36  ;;  %v1483_v39 = vadd.s32 4294967280, %v2025_v36  ;;  %v1490_v40 = vadd.s32 4294967272, %v2025_v36 }
  0xe4   :  { %v1274_v26 = vcombine.low %v1266_v21, %v1273_v25  ;;  %v1356_v62 = vcombine.low %v1334_v24, %v1341_v59  ;;  %v1497_v41 = vadd.s32 4294967264, %v2025_v36  ;;  %v1504_v43 = vadd.s32 4294967256, %v2025_v36 }
  0xe5   :  { %v1357_v27 = vcombine.low %v1348_v60, %v1355_v61  ;;  %v1479_v42 = vsub.s32 %v1476_v37, %v1741_v53  ;;  %v1486_v45 = vsub.s32 %v1483_v39, %v1741_v53  ;;  %v1511_v46 = vadd.s32 4294967248, %v2025_v36 }
  0xe6   :  { %1459 = vperm.xlu1 %1626, %v1274_v26   ;;  %v1364_v28 = vrot.slane %v1356_v62, %v1768_v1  ;;  %v1474_v50 = vsub.s32 %v2025_v36, %v1741_v53  ;;  %v1493_v32 = vsub.s32 %v1490_v40, %v1741_v53  ;;  %v1518_v47 = vadd.s32 4294967240, %v2025_v36 }
  0xe7   :  { %v1371_v29 = vrot.slane %v1357_v27, %v1768_v1  ;;  %v1500_v49 = vsub.s32 %v1497_v41, %v1741_v53  ;;  %v1525_v51 = vadd.s32 4294967232, %v2025_v36  ;;  %v1507_v54 = vsub.s32 %v1504_v43, %v1741_v53 }
  0xe8   :  { %v1514_v3 = vsub.s32 %v1511_v46, %v1741_v53  ;;  %v1521_v7 = vsub.s32 %v1518_v47, %v1741_v53  ;;  %v1539_v9 = vadd.s32 4294967216, %v2025_v36  ;;  %v1532_v11 = vadd.s32 4294967224, %v2025_v36 }
  0xe9   :  { %v1372_v30 = vcombine.low %v1364_v28, %v1371_v29  ;;  %v1528_v8 = vsub.s32 %v1525_v51, %v1741_v53  ;;  %v1546_v17 = vadd.s32 4294967208, %v2025_v36  ;;  %v1553_v57 = vadd.s32 4294967200, %v2025_v36  ;;  %v109_v47 = vld [vmem:[#allocation2] sm:$0x1] }
  0xea   :  { %v1542_v22 = vsub.s32 %v1539_v9, %v1741_v53  ;;  %v1535_v21 = vsub.s32 %v1532_v11, %v1741_v53  ;;  %v1560_v59 = vadd.s32 4294967192, %v2025_v36  ;;  %v1567_v29 = vadd.s32 4294967184, %v2025_v36 }
  0xeb   :  { %1465 = vperm.xlu1 %1626, %v1372_v30   ;;  %v1549_v62 = vsub.s32 %v1546_v17, %v1741_v53  ;;  %v1556_v27 = vsub.s32 %v1553_v57, %v1741_v53  ;;  %v1574_v30 = vadd.s32 4294967176, %v2025_v36 }
  0xec   :  { %v1570_v37 = vsub.s32 %v1567_v29, %v1741_v53 }
 0x118   :  { %v1424_v44 = vpop.permute.xlu0 %1423 }
 0x119   :  { %v1475_v4 = vrot.slane %v1424_v44, %v1474_v50 }
 0x11e   :  { %v1427_v31 = vpop.permute.xlu1 %1426 }
 0x11f   :  { %v1480_v52 = vrot.slane %v1427_v31, %v1479_v42 }
 0x121   :  { %v1482_v10 = vsel %vm1481_vm1, %v1480_v52, %v1475_v4 }
 0x122   :  { %v1430_v33 = vpop.permute.xlu1 %1429 }
 0x123   :  { %v1487_v63 = vrot.slane %v1430_v33, %v1486_v45 }
 0x125   :  { %v1489_v14 = vsel %vm1488_vm2, %v1487_v63, %v1482_v10 }
 0x127   :  { %v1433_v34 = vpop.permute.xlu1 %1432 }
 0x128   :  { %v1494_v6 = vrot.slane %v1433_v34, %v1493_v32 }
 0x12a   :  { %v1496_v55 = vsel %vm1495_vm3, %v1494_v6, %v1489_v14 }
 0x12c   :  { %v1436_v15 = vpop.permute.xlu1 %1435 }
 0x12d   :  { %v1501_v0 = vrot.slane %v1436_v15, %v1500_v49  ;;  %v1563_v15 = vsub.s32 %v1560_v59, %v1741_v53 }
 0x12f   :  { %v1503_v19 = vsel %vm1502_vm4, %v1501_v0, %v1496_v55 }
 0x132   :  { %v1451_v2 = vpop.permute.xlu0 %1450 }
 0x133   :  { %v1536_v26 = vrot.slane %v1451_v2, %v1535_v21 }
 0x137   :  { %v1439_v35 = vpop.permute.xlu1 %1438 }
 0x138   :  { %v1508_v12 = vrot.slane %v1439_v35, %v1507_v54 }
 0x13a   :  { %v1510_v23 = vsel %vm1509_vm5, %v1508_v12, %v1503_v19 }
 0x13c   :  { %v1457_v56 = vpop.permute.xlu0 %1456 }
 0x13d   :  { %v1550_v34 = vrot.slane %v1457_v56, %v1549_v62 }
 0x141   :  { %v1442_v38 = vpop.permute.xlu1 %1441 }
 0x142   :  { %v1515_v16 = vrot.slane %v1442_v38, %v1514_v3  ;;  %v1577_v38 = vsub.s32 %v1574_v30, %v1741_v53  ;;  %v1603_v53 = vstv %s2067_s0 }
 0x144   :  { %v1517_v58 = vsel %vm1516_vm6, %v1515_v16, %v1510_v23 }
 0x147   :  { %v1463_v28 = vpop.permute.xlu0 %1462 }
 0x148   :  { %v1564_v42 = vrot.slane %v1463_v28, %v1563_v15 }
 0x14c   :  { %v1445_v48 = vpop.permute.xlu1 %1444 }
 0x14d   :  { %v1522_v18 = vrot.slane %v1445_v48, %v1521_v7 }
 0x14f   :  { %v1524_v24 = vsel %vm1523_vm7, %v1522_v18, %v1517_v58 }
 0x151   :  { %v1469_v40 = vpop.permute.xlu0 %1468 }
 0x152   :  { %v1578_v44 = vrot.slane %v1469_v40, %v1577_v38 }
 0x156   :  { %v1448_v13 = vpop.permute.xlu1 %1447 }
 0x157   :  { %v1529_v20 = vrot.slane %v1448_v13, %v1528_v8 }
 0x159   :  { %v1531_v60 = vsel %vm1530_vm8, %v1529_v20, %v1524_v24 }
 0x15a   :  { %v1538_v5 = vsel %vm1537_vm9, %v1536_v26, %v1531_v60 }
 0x15c   :  { %v1454_v25 = vpop.permute.xlu1 %1453 }
 0x15d   :  { %v1543_v61 = vrot.slane %v1454_v25, %v1542_v22 }
 0x15f   :  { %v1545_v31 = vsel %vm1544_vm10, %v1543_v61, %v1538_v5 }
 0x160   :  { %v1552_v39 = vsel %vm1551_vm11, %v1550_v34, %v1545_v31 }
 0x161   :  { %v1460_v33 = vpop.permute.xlu1 %1459 }
 0x162   :  { %v1557_v35 = vrot.slane %v1460_v33, %v1556_v27 }
 0x164   :  { %v1559_v41 = vsel %vm1558_vm12, %v1557_v35, %v1552_v39 }
 0x165   :  { %v1566_v45 = vsel %vm1565_vm13, %v1564_v42, %v1559_v41 }
 0x166   :  { %v1466_v36 = vpop.permute.xlu1 %1465 }
 0x167   :  { %v1571_v43 = vrot.slane %v1466_v36, %v1570_v37 }
 0x169   :  { %v1573_v46 = vsel %vm1572_vm14, %v1571_v43, %v1566_v45 }
 0x16a   :  { %v1580_v50 = vsel %vm1579_vm15, %v1578_v44, %v1573_v46 }
 0x16b   :  { %v1587_v32 = vrot.slane %v1580_v50, %v1768_v1 }
 0x16d   :  { %v1594_v48 = vrot.slane %v1587_v32, %v1768_v1 }
 0x16f   :  { %v1596_v49 = vadd.f32 %v1594_v48, %v109_v47 }
 0x171   :  { %1597 = vst [vmem:[#allocation2] sm:$0x1] %v1596_v49 }
 0x178   :  { %v1601_v51 = vld [vmem:[#allocation2] sm:$0x1] }
 0x179   :  { %v1604_v52 = vadd.f32 %v1603_v53, %v1601_v51 }
 0x17b   :  { %1605 = vst [vmem:[#allocation4] sm:$0x1] %v1604_v52 }
 0x17c   :  { %1638 = shalt.err (!%p1635_p4)
}
 0x17d   :  { %1615 = dma.vmem_to_hbm [thread:$0]  %s1613_s20, 16, %s2070_s3, [#allocation5]  }
 0x17e   :  { %1647 = dma.done.wait [#allocation5], 16  }
 0x17f   :  { %1648 = vsyncadd [#allocation5], 4294967280 }
 0x180   :  { %1619 = vsyncpa [#allocation5], 1 }

</bundles_post_ra>
